<compile_context>
chip_gen: v6e
topology: v6e:2x2x1
jax: 0.10.0
libtpu: 0.0.40
codegen_flags: <defaults>
</compile_context>

<pallas_src>
import jax
import jax.numpy as jnp
from jax.experimental import pallas as pl
from jax.experimental.pallas import tpu as pltpu


def _graphconv_kernel(x_ref, lnorm_ref, w_ref, b_ref, o_ref):
    # x_ref:     (B, N, Fin)   full array, single grid step
    # lnorm_ref: (B, N, N)
    # w_ref:     (Fin, Fout)   pre-transposed once at init
    # b_ref:     (1, Fout)
    # o_ref:     (B, N, Fout)
    B = x_ref.shape[0]
    w = w_ref[...]
    b = b_ref[...]
    # Statically unrolled batch (B is tiny): two clean 2-D MXU matmuls per
    # batch element, f32 accumulation throughout, no batched-dot relayouts.
    for bi in range(B):
        h = jnp.dot(x_ref[bi], w, preferred_element_type=jnp.float32) + b
        out = jnp.dot(lnorm_ref[bi], h, preferred_element_type=jnp.float32)
        o_ref[bi] = out.astype(o_ref.dtype)


def prepare_params(weight, bias):
    """One-time parameter prep (call at init, NOT per forward).

    weight: (F_out, F_in) as in nn.Linear; bias: (F_out,).
    Returns (w_t, bias_row) = ((F_in, F_out), (1, F_out)).
    """
    return weight.T, bias.reshape(1, -1)


def graph_conv(x, l_norm, w_t, bias_row):
    """x: (B, N, F_in), l_norm: (B, N, N), w_t: (F_in, F_out), bias_row: (1, F_out)."""
    B, N, Fin = x.shape
    Fout = w_t.shape[1]

    itemsize = jnp.dtype(x.dtype).itemsize
    flops = 2 * B * N * Fin * Fout + 2 * B * N * N * Fout
    bytes_accessed = itemsize * (
        B * N * Fin + B * N * N + Fin * Fout + Fout + B * N * Fout
    )

    return pl.pallas_call(
        _graphconv_kernel,
        out_shape=jax.ShapeDtypeStruct((B, N, Fout), x.dtype),
        grid=(1,),
        in_specs=[
            pl.BlockSpec((B, N, Fin), lambda i: (0, 0, 0)),
            pl.BlockSpec((B, N, N), lambda i: (0, 0, 0)),
            pl.BlockSpec((Fin, Fout), lambda i: (0, 0)),
            pl.BlockSpec((1, Fout), lambda i: (0, 0)),
        ],
        out_specs=pl.BlockSpec((B, N, Fout), lambda i: (0, 0, 0)),
        compiler_params=pltpu.CompilerParams(
            dimension_semantics=("arbitrary",)),
        cost_estimate=pl.CostEstimate(
            flops=flops, transcendentals=0, bytes_accessed=bytes_accessed),
    )(x, l_norm, w_t, bias_row)


def l_norm_ref(adjacency_matrix):
    """Plain-JAX equivalent of GraphConv.l_norm (preprocessing glue)."""
    degree = adjacency_matrix.sum(axis=-1)
    # torch.rsqrt(degree.clamp(min=1e-12))
    inv_sqrt_degree = jax.lax.rsqrt(jnp.maximum(degree, 1e-12))
    return (inv_sqrt_degree[..., :, None]
            * adjacency_matrix
            * inv_sqrt_degree[..., None, :])


if __name__ == "__main__":
    key = jax.random.PRNGKey(0)
    k_x, k_adj, k_w, k_b = jax.random.split(key, 4)

    B = 2           # batch
    N = 42          # dimension (number of graph nodes), module default
    F_IN = 32       # in_features
    F_OUT = 32      # out_features

    # Deterministic parameter init (nn.Linear-style uniform bound).
    bound = 1.0 / jnp.sqrt(jnp.float32(F_IN))
    weight = jax.random.uniform(k_w, (F_OUT, F_IN), jnp.float32, -bound, bound)
    bias = jax.random.uniform(k_b, (F_OUT,), jnp.float32, -bound, bound)
    w_t, bias_row = prepare_params(weight, bias)   # once, at init time

    # Inputs.
    x = jax.random.normal(k_x, (B, N, F_IN), jnp.float32)
    adj = (jax.random.uniform(k_adj, (B, N, N)) > 0.7).astype(jnp.float32)
    adj = jnp.maximum(adj, jnp.swapaxes(adj, -1, -2))          # symmetrize
    lnorm = l_norm_ref(adj)

    out = graph_conv(x, lnorm, w_t, bias_row)
    jax.block_until_ready(out)

    # Reference check in plain JAX.
    ref = jnp.einsum("bij,bjf->bif", lnorm, x @ weight.T + bias)
    assert out.shape == (B, N, F_OUT)
    assert jnp.allclose(out, ref, atol=1e-4, rtol=1e-4)

    print("KERNEL_OK")
</pallas_src>

<mosaic_0001>
module attributes {stable_mosaic.version = 11 : i64} {
  func.func @_graphconv_kernel(%arg0: i32, %arg1: memref<2x42x32xf32, #tpu.memory_space<vmem>>, %arg2: memref<2x42x42xf32, #tpu.memory_space<vmem>>, %arg3: memref<32x32xf32, #tpu.memory_space<vmem>>, %arg4: memref<1x32xf32, #tpu.memory_space<vmem>>, %arg5: memref<2x42x32xf32, #tpu.memory_space<vmem>>) attributes {dimension_semantics = [#tpu.dimension_semantics<arbitrary>], iteration_bounds = array<i64: 1>, scalar_prefetch = 0 : i64, scratch_operands = 0 : i64, tpu.core_type = #tpu.core_type<tc>, window_params = [{pipeline_mode = #tpu.pipeline_mode<synchronous>, transform_indices = @transform_0, window_bounds = array<i64: 2, 42, 32>}, {pipeline_mode = #tpu.pipeline_mode<synchronous>, transform_indices = @transform_1, window_bounds = array<i64: 2, 42, 42>}, {pipeline_mode = #tpu.pipeline_mode<synchronous>, transform_indices = @transform_2, window_bounds = array<i64: 32, 32>}, {pipeline_mode = #tpu.pipeline_mode<synchronous>, transform_indices = @transform_3, window_bounds = array<i64: 1, 32>}, {pipeline_mode = #tpu.pipeline_mode<synchronous>, transform_indices = @transform_4, window_bounds = array<i64: 2, 42, 32>}]} {
    %c0 = arith.constant 0 : index
    %c0_0 = arith.constant 0 : index
    %0 = vector.load %arg3[%c0, %c0_0] : memref<32x32xf32, #tpu.memory_space<vmem>>, vector<32x32xf32>
    %c0_1 = arith.constant 0 : index
    %c0_2 = arith.constant 0 : index
    %1 = vector.load %arg4[%c0_1, %c0_2] : memref<1x32xf32, #tpu.memory_space<vmem>>, vector<1x32xf32>
    %c0_3 = arith.constant 0 : index
    %c0_4 = arith.constant 0 : index
    %c0_5 = arith.constant 0 : index
    %2 = vector.load %arg1[%c0_3, %c0_4, %c0_5] : memref<2x42x32xf32, #tpu.memory_space<vmem>>, vector<1x42x32xf32>
    %3 = vector.shape_cast %2 : vector<1x42x32xf32> to vector<42x32xf32>
    %cst = arith.constant dense<0.000000e+00> : vector<42x32xf32>
    %4 = tpu.matmul %3, %0, %cst {dimension_numbers = #tpu.dot_dimension_numbers<[1], [0], [0], [1], [0, 0, 1, 1], [], []>} : vector<42x32xf32>, vector<32x32xf32>, vector<42x32xf32> -> vector<42x32xf32>
    %5 = vector.broadcast %1 : vector<1x32xf32> to vector<42x32xf32>
    %6 = arith.addf %4, %5 : vector<42x32xf32>
    %c0_6 = arith.constant 0 : index
    %c0_7 = arith.constant 0 : index
    %c0_8 = arith.constant 0 : index
    %7 = vector.load %arg2[%c0_6, %c0_7, %c0_8] : memref<2x42x42xf32, #tpu.memory_space<vmem>>, vector<1x42x42xf32>
    %8 = vector.shape_cast %7 : vector<1x42x42xf32> to vector<42x42xf32>
    %cst_9 = arith.constant dense<0.000000e+00> : vector<42x32xf32>
    %9 = tpu.matmul %8, %6, %cst_9 {dimension_numbers = #tpu.dot_dimension_numbers<[1], [0], [0], [1], [0, 0, 1, 1], [], []>} : vector<42x42xf32>, vector<42x32xf32>, vector<42x32xf32> -> vector<42x32xf32>
    %c0_10 = arith.constant 0 : index
    %c0_11 = arith.constant 0 : index
    %c0_12 = arith.constant 0 : index
    %10 = vector.load %arg5[%c0_10, %c0_11, %c0_12] : memref<2x42x32xf32, #tpu.memory_space<vmem>>, vector<1x42x32xf32>
    %11 = vector.shape_cast %10 : vector<1x42x32xf32> to vector<42x32xf32>
    %12 = vector.shape_cast %9 : vector<42x32xf32> to vector<1x42x32xf32>
    tpu.vector_store %arg5[%c0_10, %c0_11, %c0_12], %12 {strides = array<i32>} : memref<2x42x32xf32, #tpu.memory_space<vmem>>, vector<1x42x32xf32>,
    %c1 = arith.constant 1 : index
    %c0_13 = arith.constant 0 : index
    %c0_14 = arith.constant 0 : index
    %13 = vector.load %arg1[%c1, %c0_13, %c0_14] : memref<2x42x32xf32, #tpu.memory_space<vmem>>, vector<1x42x32xf32>
    %14 = vector.shape_cast %13 : vector<1x42x32xf32> to vector<42x32xf32>
    %cst_15 = arith.constant dense<0.000000e+00> : vector<42x32xf32>
    %15 = tpu.matmul %14, %0, %cst_15 {dimension_numbers = #tpu.dot_dimension_numbers<[1], [0], [0], [1], [0, 0, 1, 1], [], []>} : vector<42x32xf32>, vector<32x32xf32>, vector<42x32xf32> -> vector<42x32xf32>
    %16 = vector.broadcast %1 : vector<1x32xf32> to vector<42x32xf32>
    %17 = arith.addf %15, %16 : vector<42x32xf32>
    %c1_16 = arith.constant 1 : index
    %c0_17 = arith.constant 0 : index
    %c0_18 = arith.constant 0 : index
    %18 = vector.load %arg2[%c1_16, %c0_17, %c0_18] : memref<2x42x42xf32, #tpu.memory_space<vmem>>, vector<1x42x42xf32>
    %19 = vector.shape_cast %18 : vector<1x42x42xf32> to vector<42x42xf32>
    %cst_19 = arith.constant dense<0.000000e+00> : vector<42x32xf32>
    %20 = tpu.matmul %19, %17, %cst_19 {dimension_numbers = #tpu.dot_dimension_numbers<[1], [0], [0], [1], [0, 0, 1, 1], [], []>} : vector<42x42xf32>, vector<42x32xf32>, vector<42x32xf32> -> vector<42x32xf32>
    %c1_20 = arith.constant 1 : index
    %c0_21 = arith.constant 0 : index
    %c0_22 = arith.constant 0 : index
    %21 = vector.load %arg5[%c1_20, %c0_21, %c0_22] : memref<2x42x32xf32, #tpu.memory_space<vmem>>, vector<1x42x32xf32>
    %22 = vector.shape_cast %21 : vector<1x42x32xf32> to vector<42x32xf32>
    %23 = vector.shape_cast %20 : vector<42x32xf32> to vector<1x42x32xf32>
    tpu.vector_store %arg5[%c1_20, %c0_21, %c0_22], %23 {strides = array<i32>} : memref<2x42x32xf32, #tpu.memory_space<vmem>>, vector<1x42x32xf32>,
    return
  }
  func.func @transform_0(%arg0: i32) -> (i32, i32, i32) {
    %c0_i32 = arith.constant 0 : i32
    %c0_i32_0 = arith.constant 0 : i32
    %c0_i32_1 = arith.constant 0 : i32
    %c0_i32_2 = arith.constant 0 : i32
    return %c0_i32, %c0_i32_0, %c0_i32_1 : i32, i32, i32
  }
  func.func @transform_1(%arg0: i32) -> (i32, i32, i32) {
    %c0_i32 = arith.constant 0 : i32
    %c0_i32_0 = arith.constant 0 : i32
    %c0_i32_1 = arith.constant 0 : i32
    %c0_i32_2 = arith.constant 0 : i32
    return %c0_i32, %c0_i32_0, %c0_i32_1 : i32, i32, i32
  }
  func.func @transform_2(%arg0: i32) -> (i32, i32) {
    %c0_i32 = arith.constant 0 : i32
    %c0_i32_0 = arith.constant 0 : i32
    %c0_i32_1 = arith.constant 0 : i32
    return %c0_i32, %c0_i32_0 : i32, i32
  }
  func.func @transform_3(%arg0: i32) -> (i32, i32) {
    %c0_i32 = arith.constant 0 : i32
    %c0_i32_0 = arith.constant 0 : i32
    %c0_i32_1 = arith.constant 0 : i32
    return %c0_i32, %c0_i32_0 : i32, i32
  }
  func.func @transform_4(%arg0: i32) -> (i32, i32, i32) {
    %c0_i32 = arith.constant 0 : i32
    %c0_i32_0 = arith.constant 0 : i32
    %c0_i32_1 = arith.constant 0 : i32
    %c0_i32_2 = arith.constant 0 : i32
    return %c0_i32, %c0_i32_0, %c0_i32_1 : i32, i32, i32
  }
}

</mosaic_0001>

<bundles_post_ra>
// kernel: tpu_custom_call.1
= control target key start
LH: loop header
LB: loop body
LE: loop exit
PB: predicated region body
PF: predicated region fallthrough
CT: control target
= control target key end

     0   :  { %vm34_vm0 = vcmask 261120   ;;  %vm154_vm1 = vcmask 343040   ;;  %vm173_vm2 = vcmask 1041408   ;;  %vm277_vm3 = vcmask 254976   ;;  %s884_s2 = inlined_call_operand.vmem [shape: f32[32,32], index: 2, kind: input, shape index: {}]   ;;  %s885_s0 = inlined_call_operand.vmem [shape: f32[2,42,32], index: 0, kind: input, shape index: {}]   ;;  %s886_s1 = inlined_call_operand.vmem [shape: f32[2,42,42], index: 1, kind: input, shape index: {}]   ;;  %s887_s3 = inlined_call_operand.vmem [shape: f32[1,32], index: 3, kind: input, shape index: {}]   ;;  %s888_s4 = inlined_call_operand.vmem [shape: f32[2,42,32], index: 4, kind: output, shape index: {}]  }
   0x1   :  { %v20_v0 = vld [vmem:[%s884_s2 + $0x18] sm:$0xff]  ;;  %v19_v1 = vld [vmem:[%s884_s2 + $0x10] sm:$0xff]  ;;  %v22_v2 = vld [vmem:[%s885_s0] sm:$0xff] }
   0x2   :  { %622 = vmatprep.subr.mxu0 %v20_v0  ;;  %v18_v3 = vld [vmem:[%s884_s2 + $0x8] sm:$0xff]  ;;  %630 = vmatprep.mubr.msk.f32.mxu0 %vm34_vm0, %v22_v2  ;;  %v17_v4 = vld [vmem:[%s884_s2] sm:$0xff]  ;;  %v24_v6 = vld [vmem:[%s885_s0 + $0x10] sm:$0xff] }
   0x3   :  { %623 = vmatpush3.msra.mxu0 %v20_v0  ;;  %v23_v5 = vld [vmem:[%s885_s0 + $0x8] sm:$0xff]  ;;  %v25_v7 = vld [vmem:[%s885_s0 + $0x18] sm:$0xff]  ;;  %v26_v8 = vld [vmem:[%s885_s0 + $0x20] sm:$0xff] }
   0x4   :  { %624 = vmatprep.subr.mxu0 %v19_v1  ;;  %v27_v9 = vld [vmem:[%s885_s0 + $0x28] sm:$0x3]  ;;  %v547_v10 = vld [vmem:[%s885_s0 + $0x30] sm:$0xff]  ;;  %v548_v11 = vld [vmem:[%s885_s0 + $0x38] sm:$0xff] }
   0x5   :  { %625 = vmatpush3.msra.mxu0 %v19_v1  ;;  %v549_v12 = vld [vmem:[%s885_s0 + $0x40] sm:$0xff]  ;;  %v550_v13 = vld [vmem:[%s885_s0 + $0x48] sm:$0xff]  ;;  %v551_v14 = vld [vmem:[%s885_s0 + $0x50] sm:$0xff] }
   0x6   :  { %626 = vmatprep.subr.mxu0 %v18_v3  ;;  %v552_v15 = vld [vmem:[%s885_s0 + $0x58] sm:$0x3]  ;;  %v148_v16 = vld [vmem:[%s886_s1] sm:$0xff]  ;;  %v149_v35 = vld [vmem:[%s886_s1 + $0x8] sm:$0xff] }
   0x7   :  { %627 = vmatpush3.msra.mxu0 %v18_v3  ;;  %651 = vmatprep.mubr.msk.f32.mxu1 %vm154_vm1, %v148_v16  ;;  %v533_v21 = vld [vmem:[%s887_s3] ss:$0 sm:$0xff]  ;;  %v150_v37 = vld [vmem:[%s886_s1 + $0x10] sm:$0xff]  ;;  %v151_v40 = vld [vmem:[%s886_s1 + $0x18] sm:$0xff] }
   0x8   :  { %628 = vmatprep.subr.mxu0 %v17_v4  ;;  %v152_v42 = vld [vmem:[%s886_s1 + $0x20] sm:$0xff]  ;;  %v153_v44 = vld [vmem:[%s886_s1 + $0x28] sm:$0x3]  ;;  %v559_v46 = vld [vmem:[%s886_s1 + $0x30] sm:$0xff] }
   0x9   :  { %629 = vmatpush3.msra.mxu0 %v17_v4  ;;  %v560_v48 = vld [vmem:[%s886_s1 + $0x38] sm:$0xff]  ;;  %v561_v49 = vld [vmem:[%s886_s1 + $0x40] sm:$0xff]  ;;  %v562_v50 = vld [vmem:[%s886_s1 + $0x48] sm:$0xff] }
   0xa   :  { %631 = vmatmul.mubr.msk.f32.vlgmr.msra.gmra.mxu0 %vm34_vm0, %v23_v5  ;;  %660 = vmatprep.subr.mxu0 %v20_v0  ;;  %v563_v51 = vld [vmem:[%s886_s1 + $0x50] sm:$0xff]  ;;  %v564_v52 = vld [vmem:[%s886_s1 + $0x58] sm:$0x3] }
   0xb   :  { %661 = vmatpush3.msra.mxu0 %v20_v0  ;;  %633 = vmatprep.mubr.msk.f32.mxu0 %vm34_vm0, %v24_v6 }
   0xc   :  { %662 = vmatprep.subr.mxu0 %v19_v1 }
   0xd   :  { %663 = vmatpush3.msra.mxu0 %v19_v1 }
   0xe   :  { %634 = vmatmul.mubr.msk.f32.gmra.mxu0 %vm34_vm0, %v25_v7  ;;  %664 = vmatprep.subr.mxu0 %v18_v3 }
   0xf   :  { %636 = vmatprep.mubr.msk.f32.mxu0 %vm34_vm0, %v26_v8  ;;  %665 = vmatpush3.msra.mxu0 %v18_v3 }
  0x10   :  { %666 = vmatprep.subr.mxu0 %v17_v4 }
  0x11   :  { %667 = vmatpush3.msra.mxu0 %v17_v4 }
  0x12   :  { %637 = vmatmul.mubr.msk.f32.gmra.mxu0 %vm34_vm0, %v27_v9 }
  0x13   :  { %668 = vmatprep.mubr.msk.f32.mxu0 %vm34_vm0, %v547_v10 }
  0x16   :  { %669 = vmatmul.mubr.msk.f32.vlgmr.msra.gmra.mxu0 %vm34_vm0, %v548_v11 }
  0x17   :  { %671 = vmatprep.mubr.msk.f32.mxu0 %vm34_vm0, %v549_v12 }
  0x1a   :  { %672 = vmatmul.mubr.msk.f32.gmra.mxu0 %vm34_vm0, %v550_v13 }
  0x1b   :  { %674 = vmatprep.mubr.msk.f32.mxu0 %vm34_vm0, %v551_v14 }
  0x1e   :  { %675 = vmatmul.mubr.msk.f32.gmra.mxu0 %vm34_vm0, %v552_v15 }
  0xca   :  { %v632_v17 = vpop.f32.mrf.mxu0 }
  0xcb   :  { %v125_v31 = vadd.f32 %v632_v17, %v533_v21 }
  0xcc   :  { %v119_v18 = vpop.f32.mrf.mxu0 }
  0xcd   :  { %v120_v33 = vadd.f32 %v533_v21, %v119_v18 }
  0xce   :  { %v635_v19 = vpop.f32.mrf.mxu0 }
  0xcf   :  { %v135_v27 = vadd.f32 %v635_v19, %v533_v21 }
  0xd0   :  { %v129_v20 = vpop.f32.mrf.mxu0 }
  0xd1   :  { %v130_v29 = vadd.f32 %v533_v21, %v129_v20 }
  0xd2   :  { %v638_v22 = vpop.f32.mrf.mxu0 }
  0xd3   :  { %v145_v23 = vadd.f32 %v638_v22, %v533_v21 }
  0xd4   :  { %v139_v24 = vpop.f32.mrf.mxu0 }
  0xd5   :  { %v140_v25 = vadd.f32 %v533_v21, %v139_v24  ;;  %639 = vmatprep.subr.msk.mxu1 %vm173_vm2, %v145_v23 }
  0xd6   :  { %640 = vmatpush3.msk.msra.mxu1 %vm173_vm2, %v145_v23  ;;  %v670_v26 = vpop.f32.mrf.mxu0 }
  0xd7   :  { %641 = vmatprep.subr.mxu1 %v140_v25  ;;  %v376_v45 = vadd.f32 %v670_v26, %v533_v21 }
  0xd8   :  { %642 = vmatpush3.msra.mxu1 %v140_v25  ;;  %v370_v28 = vpop.f32.mrf.mxu0 }
  0xd9   :  { %643 = vmatprep.subr.mxu1 %v135_v27  ;;  %v371_v47 = vadd.f32 %v533_v21, %v370_v28 }
  0xda   :  { %644 = vmatpush3.msra.mxu1 %v135_v27  ;;  %v673_v30 = vpop.f32.mrf.mxu0 }
  0xdb   :  { %645 = vmatprep.subr.mxu1 %v130_v29  ;;  %v386_v41 = vadd.f32 %v673_v30, %v533_v21 }
  0xdc   :  { %646 = vmatpush3.msra.mxu1 %v130_v29  ;;  %v380_v32 = vpop.f32.mrf.mxu0 }
  0xdd   :  { %647 = vmatprep.subr.mxu1 %v125_v31  ;;  %v381_v43 = vadd.f32 %v533_v21, %v380_v32 }
  0xde   :  { %648 = vmatpush3.msra.mxu1 %v125_v31  ;;  %v676_v34 = vpop.f32.mrf.mxu0 }
  0xdf   :  { %v396_v36 = vadd.f32 %v676_v34, %v533_v21  ;;  %649 = vmatprep.subr.mxu1 %v120_v33 }
  0xe0   :  { %650 = vmatpush3.msra.mxu1 %v120_v33  ;;  %v390_v38 = vpop.f32.mrf.mxu0 }
  0xe1   :  { %v391_v39 = vadd.f32 %v533_v21, %v390_v38  ;;  %652 = vmatmul.mubr.msk.f32.vlgmr.msra.gmra.mxu1 %vm154_vm1, %v149_v35  ;;  %677 = vmatprep.subr.msk.mxu1 %vm173_vm2, %v396_v36 }
  0xe2   :  { %678 = vmatpush3.msk.msra.mxu1 %vm173_vm2, %v396_v36  ;;  %654 = vmatprep.mubr.msk.f32.mxu1 %vm154_vm1, %v150_v37 }
  0xe3   :  { %679 = vmatprep.subr.mxu1 %v391_v39 }
  0xe4   :  { %680 = vmatpush3.msra.mxu1 %v391_v39 }
  0xe5   :  { %655 = vmatmul.mubr.msk.f32.gmra.mxu1 %vm154_vm1, %v151_v40  ;;  %681 = vmatprep.subr.mxu1 %v386_v41 }
  0xe6   :  { %682 = vmatpush3.msra.mxu1 %v386_v41  ;;  %657 = vmatprep.mubr.msk.f32.mxu1 %vm154_vm1, %v152_v42 }
  0xe7   :  { %683 = vmatprep.subr.mxu1 %v381_v43 }
  0xe8   :  { %684 = vmatpush3.msra.mxu1 %v381_v43 }
  0xe9   :  { %658 = vmatmul.mubr.msk.f32.gmra.mxu1 %vm154_vm1, %v153_v44  ;;  %685 = vmatprep.subr.mxu1 %v376_v45 }
  0xea   :  { %686 = vmatpush3.msra.mxu1 %v376_v45  ;;  %689 = vmatprep.mubr.msk.f32.mxu1 %vm154_vm1, %v559_v46 }
  0xeb   :  { %687 = vmatprep.subr.mxu1 %v371_v47 }
  0xec   :  { %688 = vmatpush3.msra.mxu1 %v371_v47 }
  0xed   :  { %690 = vmatmul.mubr.msk.f32.vlgmr.msra.gmra.mxu1 %vm154_vm1, %v560_v48 }
  0xee   :  { %692 = vmatprep.mubr.msk.f32.mxu1 %vm154_vm1, %v561_v49 }
  0xf1   :  { %693 = vmatmul.mubr.msk.f32.gmra.mxu1 %vm154_vm1, %v562_v50 }
  0xf2   :  { %695 = vmatprep.mubr.msk.f32.mxu1 %vm154_vm1, %v563_v51 }
  0xf5   :  { %696 = vmatmul.mubr.msk.f32.gmra.mxu1 %vm154_vm1, %v564_v52 }
 0x1a1   :  { %v653_v53 = vpop.f32.mrf.mxu1 }
 0x1a2   :  { %273 = vst.msk [vmem:[%s888_s4 + $0x8] sm:$0xff] %vm34_vm0, %v653_v53 }
 0x1a3   :  { %v243_v54 = vpop.f32.mrf.mxu1 }
 0x1a4   :  { %272 = vst.msk [vmem:[%s888_s4] sm:$0xff] %vm34_vm0, %v243_v54 }
 0x1a5   :  { %v656_v55 = vpop.f32.mrf.mxu1 }
 0x1a6   :  { %275 = vst.msk [vmem:[%s888_s4 + $0x18] sm:$0xff] %vm34_vm0, %v656_v55 }
 0x1a7   :  { %v253_v56 = vpop.f32.mrf.mxu1 }
 0x1a8   :  { %274 = vst.msk [vmem:[%s888_s4 + $0x10] sm:$0xff] %vm34_vm0, %v253_v56 }
 0x1a9   :  { %v659_v57 = vpop.f32.mrf.mxu1 }
 0x1aa   :  { %278 = vst.msk [vmem:[%s888_s4 + $0x28] sm:$0x3] %vm277_vm3, %v659_v57 }
 0x1ab   :  { %v263_v58 = vpop.f32.mrf.mxu1 }
 0x1ac   :  { %276 = vst.msk [vmem:[%s888_s4 + $0x20] sm:$0xff] %vm34_vm0, %v263_v58 }
 0x1ad   :  { %v691_v59 = vpop.f32.mrf.mxu1 }
 0x1ae   :  { %573 = vst.msk [vmem:[%s888_s4 + $0x38] sm:$0xff] %vm34_vm0, %v691_v59 }
 0x1af   :  { %v493_v60 = vpop.f32.mrf.mxu1 }
 0x1b0   :  { %572 = vst.msk [vmem:[%s888_s4 + $0x30] sm:$0xff] %vm34_vm0, %v493_v60 }
 0x1b1   :  { %v694_v61 = vpop.f32.mrf.mxu1 }
 0x1b2   :  { %575 = vst.msk [vmem:[%s888_s4 + $0x48] sm:$0xff] %vm34_vm0, %v694_v61 }
 0x1b3   :  { %v503_v62 = vpop.f32.mrf.mxu1 }
 0x1b4   :  { %574 = vst.msk [vmem:[%s888_s4 + $0x40] sm:$0xff] %vm34_vm0, %v503_v62 }
 0x1b5   :  { %v697_v63 = vpop.f32.mrf.mxu1 }
 0x1b6   :  { %577 = vst.msk [vmem:[%s888_s4 + $0x58] sm:$0x3] %vm277_vm3, %v697_v63 }
 0x1b7   :  { %v513_v0 = vpop.f32.mrf.mxu1 }
 0x1b8   :  { %576 = vst.msk [vmem:[%s888_s4 + $0x50] sm:$0xff] %vm34_vm0, %v513_v0 }

</bundles_post_ra>
